<compile_context>
chip_gen: v7x
topology: tpu7x:2x2x1
jax: 0.10.0
libtpu: 0.0.40
codegen_flags: <defaults>
</compile_context>

<pallas_src>
import jax
import jax.numpy as jnp
from jax import lax
from jax.experimental import pallas as pl
from jax.experimental.pallas import tpu as pltpu


def _pick_tile(dim, candidates):
    """Largest candidate that evenly divides `dim`, else the full dim."""
    for c in candidates:
        if c <= dim and dim % c == 0:
            return c
    return dim


_FAST_PATH_VMEM_BUDGET = 20 * 1024 * 1024  # conservative: fits v7x (64 MiB VMEM)


def _vmem_budget():
    """Generation-aware VMEM budget for the weight-resident fast path."""
    try:
        info = pltpu.get_tpu_info()
        cap = getattr(info, "vmem_capacity_bytes", None)
        if cap:
            return min(cap // 3, _FAST_PATH_VMEM_BUDGET)
    except Exception:
        pass
    return _FAST_PATH_VMEM_BUDGET


# ---------------------------------------------------------------------------
# Fast kernel: K collapsed -> one dot, bias + tanh fused, no scratch.
# ---------------------------------------------------------------------------
def _pooler_kernel_fused(x_ref, w_ref, b_ref, o_ref):
    """x_ref: (tb, K) first-token activations; w_ref: (tn, K) weight tile in
    PyTorch (out_features, in_features) layout; b_ref: (1, tn); o_ref: (tb, tn)."""
    acc = lax.dot_general(
        x_ref[...],
        w_ref[...],
        dimension_numbers=(((1,), (1,)), ((), ())),  # x @ W^T (q.k^T pattern)
        preferred_element_type=jnp.float32,
    )
    y = acc + b_ref[...].astype(jnp.float32)
    o_ref[...] = jnp.tanh(y).astype(o_ref.dtype)


# ---------------------------------------------------------------------------
# Tiled fallback kernel: K-reduction grid with an f32 accumulator (huge H only).
# ---------------------------------------------------------------------------
def _pooler_kernel_tiled(x_ref, w_ref, b_ref, o_ref, acc_ref):
    k = pl.program_id(2)

    @pl.when(k == 0)
    def _init():
        acc_ref[...] = jnp.zeros_like(acc_ref)

    acc_ref[...] += lax.dot_general(
        x_ref[...],
        w_ref[...],
        dimension_numbers=(((1,), (1,)), ((), ())),
        preferred_element_type=jnp.float32,
    )

    @pl.when(k == pl.num_programs(2) - 1)
    def _finalize():
        y = acc_ref[...] + b_ref[...].astype(jnp.float32)
        o_ref[...] = jnp.tanh(y).astype(o_ref.dtype)


def bert_pooler(hidden_states, weight, bias, *, block_b=None, block_n=None,
                block_k=None, force_tiled=False):
    """BERT pooler: tanh(hidden_states[:, 0, :] @ weight.T + bias).

    hidden_states: (B, S, H); weight: (H_out, H_in) PyTorch layout; bias: (H_out,).
    """
    B, S, H = hidden_states.shape
    N, K = weight.shape
    assert K == H, "weight in_features must equal the hidden size"
    out_dtype = hidden_states.dtype

    x_item = jnp.dtype(hidden_states.dtype).itemsize
    w_item = jnp.dtype(weight.dtype).itemsize
    o_item = jnp.dtype(out_dtype).itemsize

    aligned = (K % 128 == 0)

    # ---- first-token extraction fused into the pallas_call ------------------
    if aligned:
        # Contiguous (B, S, H) -> (B, S*H) is metadata-only; the first token's
        # features are columns [0, H).  Every column block index used below is
        # inside that range, so only first-token rows are DMA'd from HBM.
        x2d = hidden_states.reshape(B, S * H)
    else:
        # TODO(synk): unaligned hidden sizes use a tiny explicit XLA slice; a
        # Squeezed 3-D BlockSpec could fuse it but is unnecessary at these sizes.
        x2d = hidden_states[:, 0, :]

    b2d = bias.reshape(1, N)

    # ---- batch tile ----------------------------------------------------------
    tb = block_b if block_b is not None else _pick_tile(
        B, (512, 256, 128, 64, 32, 16, 8))
    assert B % tb == 0
    grid_b = B // tb

    budget = _vmem_budget()
    tk_tiled = _pick_tile(K, (512, 256, 384, 128))  # 256-multiples first (v6e/v7x MXU)

    def _fast_tn():
        """Largest lane-aligned N tile that fits the VMEM budget; prefer two
        blocks when the batch axis provides no parallelism (v7x megacore)."""
        cands = []
        if grid_b == 1 and N % 256 == 0:
            cands.append(N // 2)
        if N not in cands:
            cands.append(N)
        cands += [c for c in (2048, 1024, 512, 256, 128)
                  if c < N and N % c == 0 and c not in cands]
        for tn in cands:
            need = 2 * (tb * K * x_item + tn * K * w_item
                        + tb * tn * o_item + tn * w_item)
            if need <= budget:
                return tn
        return None

    tn_fast = block_n if (block_n is not None and not force_tiled) else _fast_tn()
    use_tiled = force_tiled or (tn_fast is None and aligned and tk_tiled < K)

    # =========================== FAST PATH ===================================
    if not use_tiled:
        if tn_fast is None:
            # TODO(synk): absurd unaligned-huge-H corner; best effort, may need
            # a larger vmem_limit_bytes.
            tn_fast = N
        tn = tn_fast
        assert N % tn == 0
        grid_n = N // tn
        grid = (grid_n, grid_b)  # N outer -> each weight stripe fetched once

        cost = pl.CostEstimate(
            flops=2 * B * N * K,
            transcendentals=B * N,
            bytes_accessed=(N * K + N) * w_item          # weight + bias, once
            + grid_n * B * K * x_item                    # x re-read per N stripe
            + B * N * o_item,
        )

        return pl.pallas_call(
            _pooler_kernel_fused,
            out_shape=jax.ShapeDtypeStruct((B, N), out_dtype),
            grid_spec=pltpu.PrefetchScalarGridSpec(
                num_scalar_prefetch=0,
                grid=grid,
                in_specs=[
                    pl.BlockSpec((tb, K), lambda j, i: (i, 0)),   # first-token x
                    pl.BlockSpec((tn, K), lambda j, i: (j, 0)),   # W (out, in)
                    pl.BlockSpec((1, tn), lambda j, i: (0, j)),   # bias
                ],
                out_specs=pl.BlockSpec((tb, tn), lambda j, i: (i, j)),
            ),
            compiler_params=pltpu.CompilerParams(
                dimension_semantics=("parallel", "parallel"),
                vmem_limit_bytes=32 * 1024 * 1024,
            ),
            cost_estimate=cost,
        )(x2d, weight, b2d)

    # =========================== TILED PATH ==================================
    tn = block_n if block_n is not None else _pick_tile(N, (512, 256, 384, 128))
    tk = block_k if block_k is not None else tk_tiled
    # Keep the whole batch in one tile when cheap, so W is streamed only once.
    tb_t = block_b if block_b is not None else (B if B <= 1024 else tb)
    assert N % tn == 0 and K % tk == 0 and B % tb_t == 0
    grid_b_t = B // tb_t
    grid_n = N // tn
    grid_k = K // tk

    cost = pl.CostEstimate(
        flops=2 * B * N * K,
        transcendentals=B * N,
        bytes_accessed=grid_b_t * N * K * w_item + N * w_item
        + grid_n * B * K * x_item + B * N * o_item,
    )

    return pl.pallas_call(
        _pooler_kernel_tiled,
        out_shape=jax.ShapeDtypeStruct((B, N), out_dtype),
        grid_spec=pltpu.PrefetchScalarGridSpec(
            num_scalar_prefetch=0,
            grid=(grid_b_t, grid_n, grid_k),
            in_specs=[
                pl.BlockSpec((tb_t, tk), lambda i, j, k: (i, k)),  # first-token x
                pl.BlockSpec((tn, tk), lambda i, j, k: (j, k)),    # W (out, in)
                pl.BlockSpec((1, tn), lambda i, j, k: (0, j)),     # bias
            ],
            out_specs=pl.BlockSpec((tb_t, tn), lambda i, j, k: (i, j)),
            scratch_shapes=[pltpu.VMEM((tb_t, tn), jnp.float32)],
        ),
        compiler_params=pltpu.CompilerParams(
            dimension_semantics=("parallel", "parallel", "arbitrary"),
            vmem_limit_bytes=32 * 1024 * 1024,
        ),
        cost_estimate=cost,
    )(x2d, weight, b2d)


if __name__ == "__main__":
    key = jax.random.PRNGKey(0)
    k_x, k_w, k_b = jax.random.split(key, 3)

    def reference(hs, w, b):
        hs32 = hs[:, 0, :].astype(jnp.float32)
        return jnp.tanh(hs32 @ w.astype(jnp.float32).T + b.astype(jnp.float32))

    # --- 1) f32, aligned H -> fast path (K collapsed, W streamed once) ------
    B, S, H = 16, 8, 256
    hidden_states = jax.random.normal(k_x, (B, S, H), dtype=jnp.float32)
    weight = jax.random.normal(k_w, (H, H), dtype=jnp.float32) * (1.0 / jnp.sqrt(H))
    bias = jax.random.normal(k_b, (H,), dtype=jnp.float32) * 0.01

    out = jax.block_until_ready(bert_pooler(hidden_states, weight, bias))
    ref = reference(hidden_states, weight, bias)
    assert out.shape == (B, H)
    assert jnp.allclose(out, ref, atol=1e-4, rtol=1e-4)

    # --- 2) bf16 end-to-end (f32 accumulation on the MXU) -------------------
    out_bf16 = jax.block_until_ready(
        bert_pooler(
            hidden_states.astype(jnp.bfloat16),
            weight.astype(jnp.bfloat16),
            bias.astype(jnp.bfloat16),
        )
    )
    ref_bf16 = reference(
        hidden_states.astype(jnp.bfloat16),
        weight.astype(jnp.bfloat16),
        bias.astype(jnp.bfloat16),
    )
    assert jnp.allclose(out_bf16.astype(jnp.float32), ref_bf16, atol=2e-2, rtol=2e-2)

    # --- 3) forced tiled-K fallback (path used only for very large H) -------
    out_tiled = jax.block_until_ready(
        bert_pooler(hidden_states, weight, bias,
                    block_b=8, block_n=128, block_k=128, force_tiled=True)
    )
    assert jnp.allclose(out_tiled, ref, atol=1e-4, rtol=1e-4)

    # --- 4) small unaligned hidden size (explicit first-token slice path) ---
    B2, S2, H2 = 2, 8, 32
    hs2 = jax.random.normal(k_x, (B2, S2, H2), dtype=jnp.float32)
    w2 = jax.random.normal(k_w, (H2, H2), dtype=jnp.float32) * (1.0 / jnp.sqrt(H2))
    b2 = jax.random.normal(k_b, (H2,), dtype=jnp.float32) * 0.01
    out2 = jax.block_until_ready(bert_pooler(hs2, w2, b2))
    assert jnp.allclose(out2, reference(hs2, w2, b2), atol=1e-5, rtol=1e-5)

    print("KERNEL_OK")
</pallas_src>

<mosaic_0001>
module attributes {stable_mosaic.version = 11 : i64} {
  func.func @_pooler_kernel_fused(%arg0: i32, %arg1: i32, %arg2: memref<16x256xf32, #tpu.memory_space<vmem>>, %arg3: memref<128x256xf32, #tpu.memory_space<vmem>>, %arg4: memref<1x128xf32, #tpu.memory_space<vmem>>, %arg5: memref<16x128xf32, #tpu.memory_space<vmem>>) attributes {dimension_semantics = [#tpu.dimension_semantics<parallel>, #tpu.dimension_semantics<parallel>], iteration_bounds = array<i64: 2, 1>, scalar_prefetch = 0 : i64, scratch_operands = 0 : i64, tpu.core_type = #tpu.core_type<tc>, window_params = [{transform_indices = @transform_0, window_bounds = array<i64: 16, 256>}, {transform_indices = @transform_1, window_bounds = array<i64: 128, 256>}, {transform_indices = @transform_2, window_bounds = array<i64: 1, 128>}, {transform_indices = @transform_3, window_bounds = array<i64: 16, 128>}]} {
    %c0 = arith.constant 0 : index
    %c0_0 = arith.constant 0 : index
    %0 = vector.load %arg2[%c0, %c0_0] : memref<16x256xf32, #tpu.memory_space<vmem>>, vector<16x256xf32>
    %c0_1 = arith.constant 0 : index
    %c0_2 = arith.constant 0 : index
    %1 = vector.load %arg3[%c0_1, %c0_2] : memref<128x256xf32, #tpu.memory_space<vmem>>, vector<128x256xf32>
    %cst = arith.constant dense<0.000000e+00> : vector<16x128xf32>
    %2 = tpu.matmul %0, %1, %cst {dimension_numbers = #tpu.dot_dimension_numbers<[1], [1], [0], [0], [0, 0, 1, 0], [], []>} : vector<16x256xf32>, vector<128x256xf32>, vector<16x128xf32> -> vector<16x128xf32>
    %c0_3 = arith.constant 0 : index
    %c0_4 = arith.constant 0 : index
    %3 = vector.load %arg4[%c0_3, %c0_4] : memref<1x128xf32, #tpu.memory_space<vmem>>, vector<1x128xf32>
    %4 = vector.broadcast %3 : vector<1x128xf32> to vector<16x128xf32>
    %5 = arith.addf %2, %4 : vector<16x128xf32>
    %6 = math.tanh %5 : vector<16x128xf32>
    %c0_5 = arith.constant 0 : index
    %c0_6 = arith.constant 0 : index
    %7 = vector.load %arg5[%c0_5, %c0_6] : memref<16x128xf32, #tpu.memory_space<vmem>>, vector<16x128xf32>
    tpu.vector_store %arg5[%c0_5, %c0_6], %6 {strides = array<i32>} : memref<16x128xf32, #tpu.memory_space<vmem>>, vector<16x128xf32>,
    return
  }
  func.func @transform_0(%arg0: i32, %arg1: i32) -> (i32, i32) {
    %c0_i32 = arith.constant 0 : i32
    %c0_i32_0 = arith.constant 0 : i32
    return %arg1, %c0_i32 : i32, i32
  }
  func.func @transform_1(%arg0: i32, %arg1: i32) -> (i32, i32) {
    %c0_i32 = arith.constant 0 : i32
    %c0_i32_0 = arith.constant 0 : i32
    return %arg0, %c0_i32 : i32, i32
  }
  func.func @transform_2(%arg0: i32, %arg1: i32) -> (i32, i32) {
    %c0_i32 = arith.constant 0 : i32
    %c0_i32_0 = arith.constant 0 : i32
    return %c0_i32, %arg0 : i32, i32
  }
  func.func @transform_3(%arg0: i32, %arg1: i32) -> (i32, i32) {
    %c0_i32 = arith.constant 0 : i32
    return %arg1, %arg0 : i32, i32
  }
}

</mosaic_0001>

<bundles_post_ra>
// kernel: tpu_custom_call.1
= control target key start
LH: loop header
LB: loop body
LE: loop exit
PB: predicated region body
PF: predicated region fallthrough
CT: control target
= control target key end

     0   :  { %8 = vsyncpa [#allocation3], 0  ;;  %s1085_s0 = inlined_call_operand.hbm [shape: f32[16,2048], index: 0, kind: input, shape index: {}]   ;;  %s1086_s1 = inlined_call_operand.hbm [shape: f32[256,256], index: 1, kind: input, shape index: {}]   ;;  %s1087_s2 = inlined_call_operand.vmem [shape: f32[1,256], index: 2, kind: input, shape index: {}]   ;;  %s1088_s3 = inlined_call_operand.hbm [shape: f32[16,256], index: 3, kind: output, shape index: {}]  }
   0x1   :  { %9 = vsyncpa [#allocation6], 0 }
   0x2   :  { %11 = vsyncpa [#allocation6 + $0x1], 0 }
   0x3   :  { %12 = vsyncpa [#allocation4], 0 }
   0x4   :  { %14 = vsyncpa [#allocation4 + $0x1], 0  ;;  %s815_s12 = smov 0   ;;  %s817_s13 = smov 0  }
   0x5   :  { %s819_s14 = smov 0   ;;  %s821_s15 = smov 0  }
   0x6   :  { %s823_s16 = smov 0   ;;  %s825_s17 = smov 0  }
   0x7 LB: > { %s489_s18 = sadd.s32 4294967295, %s784_s17   ;;  %s490_s19 = sadd.s32 4294967294, %s784_s17   ;;  %s784_s17 = sphi %s825_s17, %s20_s17   ;;  %s780_s16 = sphi %s823_s16, %s1111_s16   ;;  %s776_s15 = sphi %s821_s15, %s1110_s15   ;;  %s772_s14 = sphi %s819_s14, %s1109_s14   ;;  %s768_s13 = sphi %s817_s13, %s1108_s13   ;;  %s764_s12 = sphi %s815_s12, %s1107_s12  }
   0x8   : > { %p78_p0 = scmp.ne.s32.totalorder %s768_s13, %s764_s12  ;;  %p849_p1 = scmp.eq.s32.totalorder %s489_s18, 0 }
   0x9   : > { %p853_p2 = scmp.eq.s32.totalorder %s489_s18, 1  ;;  %p136_p3 = scmp.eq.s32.totalorder %s490_s19, 1 }
   0xa   : > { %s1093_s20 = scalar_select %p849_p1, 1, 0 }
   0xb   : > { %s1094_s21 = scalar_select %p853_p2, 1, 0 }
   0xc   : > { %p859_p4 = por %p849_p1, %p78_p0  ;;  %p491_p5 = scmp.ge.s32.totalorder %s784_s17, 1 }
   0xd   : > { %p864_p6 = por %p136_p3, %p78_p0  ;;  %p143_p7 = scmp.lt.s32.totalorder %s784_s17, 3 }
   0xe   : > { %s1095_s22 = scalar_select %p859_p4, 1, 0 }
   0xf   : > { %s1096_s23 = scalar_select %p864_p6, 1, 0 }
  0x10   : > { %p869_p8 = pnand %p491_p5, %p143_p7  ;;  %s786_s25 = smov [#allocation2]  }
  0x11   : > { %s159_s26 = sshll.u32 %s786_s25, 4  ;;  %s640_s30 = scalar_lea.hbm %s1085_s0, 512  ;;  %s873_s26 = int_to_ptr.vmem [resolvable:$true] %s159_s26 }
  0x12   : > { %s1097_s24 = scalar_select %p869_p8, 1, 0 }
  0x13   : > { %p565_p9 = pneg %p869_p8  ;;  %p641_p12 = scmp.ne.s32.totalorder %s1085_s0, %s640_s30 }
  0x14   : > { %s645_s8 = scalar_lea.hbm %s1085_s0, 4096  ;;  %p647_p7 = scmp.lt.u32.totalorder %s640_s30, %s1085_s0 }
  0x15   : > { %p880_p11 = pnand %p565_p9, %p849_p1  ;;  %p646_p5 = scmp.lt.u32.totalorder %s645_s8, %s640_s30 }
  0x17   : > { %p642_p13 = pneg %p880_p11  ;;  %p648_p9 = por %p647_p7, %p646_p5 }
  0x19   : > { %p643_p0 = pnand %p642_p13, %p641_p12 }
  0x1b   : > { %p644_p3 = pneg %p643_p0 }
  0x1d   : > { %p649_p10 = pnand %p648_p9, %p644_p3 }
  0x1f   : > { %652 = shalt.err (!%p649_p10)
}
  0x20   : > { %s653_s11 = scalar_lea.vmem %s873_s26, 512  ;;  %p661_p0 = scmp.lt.s32.totalorder %s873_s26, %s873_s26 }
  0x21   : > { %p654_p6 = scmp.ne.s32.totalorder %s873_s26, %s653_s11  ;;  %p662_p1 = scmp.lt.s32.totalorder %s653_s11, %s653_s11 }
  0x23   : > { %p656_p4 = pnand %p654_p6, %p642_p13  ;;  %p663_p8 = por %p662_p1, %p661_p0 }
  0x25   : > { %p657_p12 = pneg %p656_p4 }
  0x27   : > { %p664_p2 = pnand %p663_p8, %p657_p12 }
  0x29   : > { %667 = shalt.err (!%p664_p2)
}
  0x2a   : > { %s787_s18 = smov 2048   ;;  %s788_s19 = smov 256  }
  0x2b   : > { %s789_s25 = smov 16   ;;  %s32_s30 = sadd.s32 1, %s780_s16 }
  0x2c   : > { %568 = dma.hbm_to_vmem [thread:$0]  (!%p880_p11), %s1085_s0, 512, %s873_s26, [#allocation3], %s787_s18, %s788_s19, %s789_s25  }
  0x2d   : > { %s65_s4 = sadd.s32 1, %s772_s14  ;;  %p34_p1 = scmp.ge.s32.totalorder %s32_s30, 2 }
  0x2e   : > { %p72_p2 = scmp.ne.s32.totalorder %s772_s14, %s768_s13  ;;  %p73_p4 = scmp.eq.s32.totalorder %s784_s17, 0 }
  0x2f   : > { %p578_p6 = scmp.lt.s32.totalorder %s784_s17, 2  ;;  %s1113_s30 = smov (%p34_p1, %s32_s30), 0 }
  0x30   : > { %p74_p8 = por %p73_p4, %p72_p2  ;;  %p1099_p10 = scmp.ne.s32.totalorder %s1094_s21, 0 }
  0x31   : > { %s62_s5 = ssub.s32 %s780_s16, %s1113_s30  ;;  %s173_s6 = sand.u32 1, %s772_s14  }
  0x32   : > { %p920_p13 = por %p1099_p10, %p72_p2  ;;  %p63_p3 = scmp.eq.s32.totalorder %s62_s5, 0 }
  0x33   : > { %s494_s26 = sshll.u32 %s173_s6, 8  ;;  %s508_s7 = sshll.u32 %s780_s16, 12 }
  0x34   : > { %s929_s8 = scalar_select %p63_p3, %s772_s14, %s65_s4  }
  0x35   : > { %s934_s11 = scalar_lea.hbm %s1086_s1, %s508_s7  ;;  %s177_s21 = scalar_lea.vmem [#allocation5], %s494_s26 }
  0x36   : > { %s185_s18 = sshll.u32 %s177_s21, 4  ;;  %p938_p11 = pnand %p578_p6, %p74_p8  ;;  %s942_s18 = int_to_ptr.vmem [resolvable:$true] %s185_s18 }
  0x37   : > { %s944_s29 = scalar_lea.sflag [#allocation6], %s173_s6  ;;  %s668_s4 = scalar_lea.hbm %s934_s11, 4096 }
  0x38   : > { %p669_p5 = scmp.ne.s32.totalorder %s934_s11, %s668_s4  ;;  %p670_p7 = pneg %p938_p11 }
  0x39   : > { %s673_s7 = scalar_lea.hbm %s1086_s1, 8192  ;;  %p674_p0 = scmp.lt.u32.totalorder %s934_s11, %s1086_s1 }
  0x3a   : > { %p671_p9 = pnand %p670_p7, %p669_p5  ;;  %p675_p1 = scmp.lt.u32.totalorder %s673_s7, %s668_s4 }
  0x3b   : > { %p677_p4 = scmp.lt.u32.totalorder %s668_s4, %s934_s11 }
  0x3c   : > { %p672_p12 = pneg %p671_p9  ;;  %p676_p2 = por %p675_p1, %p674_p0 }
  0x3e   : > { %p678_p6 = por %p677_p4, %p676_p2 }
  0x40   : > { %p679_p8 = pnand %p678_p6, %p672_p12 }
  0x42   : > { %682 = shalt.err (!%p679_p8)
}
  0x43   : > { %s683_s6 = scalar_lea.vmem %s942_s18, 4096  ;;  %s790_s21 = smov [#allocation5]  }
  0x44   : > { %p684_p10 = scmp.ne.s32.totalorder %s942_s18, %s683_s6  ;;  %s688_s5 = sshll.u32 %s790_s21, 4  ;;  %s689_s5 = int_to_ptr.vmem [resolvable:$false] %s688_s5 }
  0x45   : > { %s690_s26 = scalar_lea.vmem %s689_s5, 8192  ;;  %p691_p9 = scmp.lt.s32.totalorder %s942_s18, %s689_s5 }
  0x46   : > { %p686_p3 = pnand %p684_p10, %p670_p7  ;;  %p692_p0 = scmp.lt.s32.totalorder %s690_s26, %s683_s6 }
  0x48   : > { %p687_p5 = pneg %p686_p3  ;;  %p693_p1 = por %p692_p0, %p691_p9 }
  0x4a   : > { %p694_p2 = pnand %p693_p1, %p687_p5 }
  0x4c   : > { %697 = shalt.err (!%p694_p2)
}
  0x4d   : > { %572 = dma.hbm_to_vmem [thread:$0]  (!%p938_p11), %s934_s11, 4096, %s942_s18, %s944_s29, %s788_s19, %s788_s19, %s789_s25  }
  0x4e   : > { %p1102_p7 = scmp.ne.s32.totalorder %s1097_s24, 0 }
  0x4f   : > { %p1103_p12 = scmp.ne.s32.totalorder (!%p1102_p7), %s1093_s20, 0 }
  0x50   : > { %203 = sbr.rel (%p1102_p7) target bundleno = 401 (0x191), region = 32 }
  0x57   : > { %751 = dma.done.wait (%p1103_p12), [#allocation3], 512  }
  0x58   : > { %753 = vsyncadd (%p1103_p12), [#allocation3], 4294966784  ;;  %s982_s4 = sand.u32 1, %s768_s13   ;;  %p1104_p11 = scmp.ne.s32.totalorder %s1095_s22, 0 }
  0x59   : > { %s500_s28 = sshll.u32 %s982_s4, 8  ;;  %s210_s7 = scalar_lea.sflag [#allocation6], %s982_s4 }
  0x5a   : > { %s986_s9 = scalar_lea.vmem [#allocation5], %s500_s28 }
  0x5b   : > { %755 = dma.done.wait (%p1104_p11), %s210_s7, 4096  }
  0x5c   : > { %757 = vsyncadd (%p1104_p11), %s210_s7, 4294963200  ;;  %v250_v0 = vld [vmem:[%s986_s9 + $0x8] sm:$0xff]  ;;  %v252_v1 = vld [vmem:[%s986_s9 + $0x18] sm:$0xff]  ;;  %p241_p4 = scmp.lt.s32.totalorder %s776_s15, 1  ;;  %s501_s25 = sshll.u32 %s982_s4, 4 }
  0x5d   : > { %v249_v2 = vld [vmem:[%s986_s9] sm:$0xff]  ;;  %v509_v3 = vpack.c.bf16 %v252_v1, %v250_v0  ;;  %v251_v4 = vld [vmem:[%s986_s9 + $0x10] sm:$0xff]  ;;  %v254_v5 = vld [vmem:[%s986_s9 + $0x28] sm:$0xff]  ;;  %s504_s11 = sshll.u32 %s776_s15, 7  ;;  %s238_s18 = scalar_lea.vmem [#allocation7], %s501_s25 }
  0x5e   : > { %v256_v6 = vld [vmem:[%s986_s9 + $0x38] sm:$0xff]  ;;  %v511_v7 = vpack.c.bf16 %v251_v4, %v249_v2  ;;  %v253_v9 = vld [vmem:[%s986_s9 + $0x20] sm:$0xff]  ;;  %v255_v10 = vld [vmem:[%s986_s9 + $0x30] sm:$0xff]  ;;  %s242_s20 = scalar_select %p241_p4, %s776_s15, 1 }
  0x5f   : > { %v513_v8 = vpack.c.bf16 %v256_v6, %v254_v5  ;;  %510 = vmatprep.subr.bf16.mxu0 %v509_v3  ;;  %541 = vmatprep.subr.bf16.mxu1 %v509_v3  ;;  %v258_v11 = vld [vmem:[%s986_s9 + $0x48] sm:$0xff]  ;;  %v260_v12 = vld [vmem:[%s986_s9 + $0x58] sm:$0xff]  ;;  %v515_v13 = vpack.c.bf16 %v255_v10, %v253_v9  ;;  %v257_v17 = vld [vmem:[%s986_s9 + $0x40] sm:$0xff]  ;;  %s383_s29 = sshll.u32 %s238_s18, 4  ;;  %s1034_s21 = scalar_lea.hbm %s1088_s3, %s504_s11  ;;  %s1036_s29 = int_to_ptr.vmem [resolvable:$true] %s383_s29 }
  0x60   : > { %512 = vmatpush1.bf16.xpose.msra.mxu0 %v511_v7  ;;  %549 = vmatpush1.bf16.xpose.msra.mxu1 %v511_v7  ;;  %v517_v14 = vpack.c.bf16 %v260_v12, %v258_v11  ;;  %v246_v15 = vld [vmem:[#allocation2 + $0x8] sm:$0xff]  ;;  %v248_v16 = vld [vmem:[#allocation2 + $0x18] sm:$0xff]  ;;  %v259_v18 = vld [vmem:[%s986_s9 + $0x50] sm:$0xff]  ;;  %s243_s19 = scalar_lea.vmem %s1087_s2, %s242_s20  ;;  %s368_s5 = scalar_lea.sflag [#allocation4], %s982_s4 }
  0x61   : > { %514 = vmatprep.subr.bf16.mxu0 %v513_v8  ;;  %542 = vmatprep.subr.bf16.mxu1 %v513_v8  ;;  %v262_v19 = vld [vmem:[%s986_s9 + $0x68] sm:$0xff]  ;;  %v264_v20 = vld [vmem:[%s986_s9 + $0x78] sm:$0xff]  ;;  %v519_v21 = vpack.c.bf16 %v259_v18, %v257_v17  ;;  %v261_v23 = vld [vmem:[%s986_s9 + $0x60] sm:$0xff]  ;;  %s698_s26 = scalar_lea.vmem %s1036_s29, 256  ;;  %s791_s15 = smov [#allocation7]  }
  0x62   : > { %352 = vmatprep.mubr.f32.mxu0 %v246_v15  ;;  %357 = vmatprep.mubr.f32.mxu1 %v248_v16  ;;  %v521_v22 = vpack.c.bf16 %v264_v20, %v262_v19  ;;  %v263_v24 = vld [vmem:[%s986_s9 + $0x70] sm:$0xff]  ;;  %v266_v25 = vld [vmem:[%s986_s9 + $0x88] sm:$0xff]  ;;  %v268_v26 = vld [vmem:[%s986_s9 + $0x98] sm:$0xff]  ;;  %p699_p6 = scmp.ne.s32.totalorder %s1036_s29, %s698_s26  ;;  %s702_s28 = sshll.u32 %s791_s15, 4  ;;  %s703_s28 = int_to_ptr.vmem [resolvable:$false] %s702_s28 }
  0x63   : > { %v523_v27 = vpack.c.bf16 %v263_v24, %v261_v23  ;;  %v525_v28 = vpack.c.bf16 %v268_v26, %v266_v25  ;;  %v265_v29 = vld [vmem:[%s986_s9 + $0x80] sm:$0xff]  ;;  %v267_v30 = vld [vmem:[%s986_s9 + $0x90] sm:$0xff]  ;;  %v270_v31 = vld [vmem:[%s986_s9 + $0xa8] sm:$0xff]  ;;  %s704_s7 = scalar_lea.vmem %s703_s28, 512  ;;  %p705_p3 = scmp.lt.s32.totalorder %s1036_s29, %s703_s28 }
  0x64   : > { %v272_v32 = vld [vmem:[%s986_s9 + $0xb8] sm:$0xff]  ;;  %v527_v33 = vpack.c.bf16 %v267_v30, %v265_v29  ;;  %v269_v35 = vld [vmem:[%s986_s9 + $0xa0] sm:$0xff]  ;;  %v271_v36 = vld [vmem:[%s986_s9 + $0xb0] sm:$0xff]  ;;  %p700_p8 = pnand %p699_p6, %p920_p13  ;;  %p706_p5 = scmp.lt.s32.totalorder %s704_s7, %s698_s26 }
  0x65   : > { %v529_v34 = vpack.c.bf16 %v272_v32, %v270_v31  ;;  %v274_v37 = vld [vmem:[%s986_s9 + $0xc8] sm:$0xff]  ;;  %v276_v38 = vld [vmem:[%s986_s9 + $0xd8] sm:$0xff]  ;;  %v531_v39 = vpack.c.bf16 %v271_v36, %v269_v35  ;;  %v273_v41 = vld [vmem:[%s986_s9 + $0xc0] sm:$0xff] }
  0x66   : > { %v533_v40 = vpack.c.bf16 %v276_v38, %v274_v37  ;;  %v275_v42 = vld [vmem:[%s986_s9 + $0xd0] sm:$0xff]  ;;  %v278_v43 = vld [vmem:[%s986_s9 + $0xe8] sm:$0xff]  ;;  %v280_v44 = vld [vmem:[%s986_s9 + $0xf8] sm:$0xff]  ;;  %p701_p10 = pneg %p700_p8  ;;  %p707_p9 = por %p706_p5, %p705_p3 }
  0x67   : > { %v535_v45 = vpack.c.bf16 %v275_v42, %v273_v41  ;;  %v537_v46 = vpack.c.bf16 %v280_v44, %v278_v43  ;;  %v277_v47 = vld [vmem:[%s986_s9 + $0xe0] sm:$0xff]  ;;  %v279_v48 = vld [vmem:[%s986_s9 + $0xf0] sm:$0xff] }
  0x68   : > { %516 = vmatpush1.bf16.xpose.msra.mxu0 %v515_v13  ;;  %550 = vmatpush1.bf16.xpose.msra.mxu1 %v515_v13  ;;  %v539_v49 = vpack.c.bf16 %v279_v48, %v277_v47  ;;  %v245_v50 = vld [vmem:[#allocation2] sm:$0xff]  ;;  %v247_v51 = vld [vmem:[#allocation2 + $0x10] sm:$0xff]  ;;  %p708_p0 = pnand %p707_p9, %p701_p10 }
  0x69   : > { %518 = vmatprep.subr.bf16.mxu0 %v517_v14  ;;  %543 = vmatprep.subr.bf16.mxu1 %v517_v14  ;;  %v502_v52 = vld [vmem:[%s243_s19] ss:$0 sm:$0xff] }
  0x70   : > { %520 = vmatpush1.bf16.xpose.msra.mxu0 %v519_v21  ;;  %551 = vmatpush1.bf16.xpose.msra.mxu1 %v519_v21 }
  0x71   : > { %522 = vmatprep.subr.bf16.mxu0 %v521_v22  ;;  %544 = vmatprep.subr.bf16.mxu1 %v521_v22 }
  0x78   : > { %524 = vmatpush1.bf16.xpose.msra.mxu0 %v523_v27  ;;  %552 = vmatpush1.bf16.xpose.msra.mxu1 %v523_v27 }
  0x79   : > { %526 = vmatprep.subr.bf16.mxu0 %v525_v28  ;;  %545 = vmatprep.subr.bf16.mxu1 %v525_v28 }
  0x80   : > { %528 = vmatpush1.bf16.xpose.msra.mxu0 %v527_v33  ;;  %553 = vmatpush1.bf16.xpose.msra.mxu1 %v527_v33 }
  0x81   : > { %530 = vmatprep.subr.bf16.mxu0 %v529_v34  ;;  %546 = vmatprep.subr.bf16.mxu1 %v529_v34 }
  0x88   : > { %532 = vmatpush1.bf16.xpose.msra.mxu0 %v531_v39  ;;  %554 = vmatpush1.bf16.xpose.msra.mxu1 %v531_v39 }
  0x89   : > { %534 = vmatprep.subr.bf16.mxu0 %v533_v40  ;;  %547 = vmatprep.subr.bf16.mxu1 %v533_v40 }
  0x90   : > { %536 = vmatpush1.bf16.xpose.msra.mxu0 %v535_v45  ;;  %555 = vmatpush1.bf16.xpose.msra.mxu1 %v535_v45 }
  0x91   : > { %538 = vmatprep.subr.bf16.mxu0 %v537_v46  ;;  %548 = vmatprep.subr.bf16.mxu1 %v537_v46 }
  0x98   : > { %540 = vmatpush1.bf16.xpose.msra.mxu0 %v539_v49  ;;  %556 = vmatpush1.bf16.xpose.msra.mxu1 %v539_v49 }
  0x9f   : > { %353 = vmatmul.mubr.f32.vlgmr.msra.gmra.mrb[0].mxu0 %v245_v50  ;;  %358 = vmatmul.mubr.f32.vlgmr.msra.gmra.mrb[0].mxu1 %v247_v51 }
 0x172   : > { %v354_v53 = vpop.f32.mrb[0].mxu0  ;;  %v359_v54 = vpop.f32.mrb[0].mxu1 }
 0x173   : > { %v355_v55 = vadd.f32 %v502_v52, %v354_v53  ;;  %v360_v56 = vadd.f32 %v502_v52, %v359_v54  ;;  %v356_v57 = vpop.f32.mrb[1].mxu0  ;;  %v361_v58 = vpop.f32.mrb[1].mxu1 }
 0x175   : > { %636 = vtanh.f32 %v355_v55 }
 0x176   : > { %638 = vtanh.f32 %v360_v56 }
 0x17f   : > { %v637_v59 = vpop.eup %636 }
 0x180   : > { %v639_v60 = vpop.eup %638  ;;  %365 = vst [vmem:[%s238_s18] sm:$0xff] %v637_v59 }
 0x181   : > { %366 = vst [vmem:[%s238_s18 + $0x8] sm:$0xff] %v639_v60 }
 0x182   : > { %711 = shalt.err (!%p708_p0)
}
 0x183   : > { %s712_s9 = scalar_lea.hbm %s1034_s21, 256  ;;  %s716_s24 = scalar_lea.hbm %s1088_s3, 512 }
 0x184   : > { %p713_p1 = scmp.ne.s32.totalorder %s1034_s21, %s712_s9  ;;  %p717_p12 = scmp.lt.u32.totalorder %s1034_s21, %s1088_s3 }
 0x185   : > { %p718_p11 = scmp.lt.u32.totalorder %s716_s24, %s712_s9  ;;  %p720_p6 = scmp.lt.u32.totalorder %s712_s9, %s1034_s21 }
 0x186   : > { %p714_p2 = pnand %p713_p1, %p920_p13 }
 0x187   : > { %p719_p4 = por %p718_p11, %p717_p12 }
 0x188   : > { %p715_p7 = pneg %p714_p2 }
 0x189   : > { %p721_p8 = por %p720_p6, %p719_p4 }
 0x18b   : > { %p722_p10 = pnand %p721_p8, %p715_p7 }
 0x18d   : > { %725 = shalt.err (!%p722_p10)
}
 0x18e   : > { %s792_s11 = smov 128   ;;  %s793_s18 = smov 256  }
 0x18f   : > { %s794_s10 = smov 8  }
 0x190   : > { %563 = dma.vmem_to_hbm [thread:$0]  (%p920_p13), %s1036_s29, 256, %s1034_s21, %s368_s5, %s792_s11, %s793_s18, %s794_s10  }
 0x191 PF: > { %s398_s6 = sand.u32 1, %s764_s12   ;;  %p1105_p3 = scmp.ne.s32.totalorder %s1096_s23, 0 }
 0x192   : > { %p1106_p5 = scmp.ge.s32.totalorder %s784_s17, 2  ;;  %s399_s26 = scalar_lea.sflag [#allocation4], %s398_s6 }
 0x194   : > { %p574_p9 = pnand %p1106_p5, %p1105_p3 }
 0x196   : > { %759 = dma.done.wait (!%p574_p9), %s399_s26, 256  }
 0x197   : > { %761 = vsyncadd (!%p574_p9), %s399_s26, 4294967040  ;;  %s20_s17 = sadd.s32 1, %s784_s17   ;;  %s1107_s12 = smov %s768_s13 }
 0x198   : > { %p17_p0 = scmp.ge.s32.totalorder %s20_s17, 4   ;;  %s1108_s13 = smov %s772_s14 }
 0x199   : > { %s1109_s14 = smov %s929_s8  ;;  %s1110_s15 = smov %s780_s16 }
 0x19a   : > { %s1111_s16 = smov %s1113_s30  ;;  %19 = sbr.rel (!%p17_p0) target bundleno = 7 (0x7), region = 86 }
 0x1a1   :  { %404 = vsyncpa [#allocation3], 1 }
 0x1a2   :  { %406 = vsyncpa [#allocation3 + $0x1], 1 }
 0x1a3   :  { %407 = vsyncpa [#allocation6], 1 }
 0x1a4   :  { %409 = vsyncpa [#allocation6 + $0x1], 1 }
 0x1a5   :  { %410 = vsyncpa [#allocation4], 1 }
 0x1a6   :  { %412 = vsyncpa [#allocation4 + $0x1], 1 }

</bundles_post_ra>
